<compile_context>
chip_gen: v5e
topology: v5e:2x2
jax: 0.10.0
libtpu: 0.0.40
codegen_flags: <defaults>
</compile_context>

<pallas_src>
import numpy as np
import jax
import jax.numpy as jnp
from jax.experimental import pallas as pl
from jax.experimental.pallas import tpu as pltpu


_TWO_PI = float(2.0 * np.pi)
# lowbias32-style avalanche hash constants.
_HASH_M1 = np.uint32(0x7FEB352D)
_HASH_M2 = np.uint32(0x846CA68B)


def _round_up(x, m):
    return ((x + m - 1) // m) * m


def _hash_gauss(idx_u32, seed_u32):
    """Counter-based approx N(0,1): lowbias32 hash -> Irwin-Hall(3).

    Pure element-wise uint32 / VPU ops (no EUP transcendentals, no TPU-only
    PRNG primitives), deterministic in (index, seed).  Used verbatim by both
    the Pallas kernel and the pure-JAX reference, so results are reproducible.
    """
    x = idx_u32 ^ seed_u32
    x = x ^ (x >> 16)
    x = x * _HASH_M1
    x = x ^ (x >> 15)
    x = x * _HASH_M2
    x = x ^ (x >> 16)
    # Three ~10/11-bit fields -> sum of 3 uniforms (mean 1.5, var 1/4).
    u0 = (x & np.uint32(0x7FF)).astype(jnp.int32).astype(jnp.float32)
    u1 = ((x >> 11) & np.uint32(0x7FF)).astype(jnp.int32).astype(jnp.float32)
    u2 = (x >> 22).astype(jnp.int32).astype(jnp.float32)
    s = u0 * (1.0 / 2048.0) + u1 * (1.0 / 2048.0) + u2 * (1.0 / 1024.0)
    return (s - 1.5) * 2.0            # ~N(0, 1), plenty for additive noise


def _make_sine_kernel(sine_amp, noise_std, voiced_threshold, tl, kp):
    sine_amp = float(sine_amp)
    noise_std = float(noise_std)
    voiced_threshold = float(voiced_threshold)
    unvoiced_amp = sine_amp / 3.0

    def kernel(seed_ref, f0_ref, ph_ref, c_ref, out_ref):
        f0 = f0_ref[0]                       # (tl, 1)  frame-rate F0
        ph = ph_ref[0]                       # (tl, 1)  per-frame phase offset
        c1 = c_ref[0]                        # (1, Kp)  (u+1)(h+1)/sr
        c2 = c_ref[1]                        # (1, Kp)  (h+1)
        c3 = c_ref[2]                        # (1, Kp)  rand_ini[h]

        # rad[l, k] = f0[l]*c1[k] + ph[l]*c2[k] + c3[k],  k = u*dim + h
        rad = f0 * c1 + ph * c2 + c3                      # (tl, Kp) on VPU
        rad = rad - jnp.floor(rad)                        # range-reduce, period 1
        # TODO(synk): on v6e/v7x a bf16 sin (cast rad->bf16) roughly halves EUP
        # time; kept f32 here so the kernel matches the f32 reference exactly.
        sines = jnp.sin(_TWO_PI * rad) * sine_amp         # one EUP op / elem

        uv = (f0 > voiced_threshold).astype(jnp.float32)  # (tl, 1)
        noise_amp = uv * noise_std + (1.0 - uv) * unvoiced_amp

        # In-kernel counter-based Gaussian noise: cheap VPU hash; nothing is
        # streamed to/from HBM besides the single fused output.
        row = jax.lax.broadcasted_iota(jnp.int32, (tl, kp), 0)
        col = jax.lax.broadcasted_iota(jnp.int32, (tl, kp), 1)
        gidx = ((pl.program_id(0) * tl + row) * kp + col).astype(jnp.uint32)
        z = _hash_gauss(gidx, seed_ref[0].astype(jnp.uint32))

        out_ref[0] = (sines * uv + noise_amp * z).astype(out_ref.dtype)

    return kernel


class SineGenPallas:
    """Pallas-TPU SineGen: __call__(f0, upp, key) -> (sines, rand_ini, seed)."""

    def __init__(self, samp_rate, harmonic_num=0, sine_amp=0.1,
                 noise_std=0.003, voiced_threshold=0, out_dtype=jnp.float32):
        self.sine_amp = sine_amp
        self.noise_std = noise_std
        self.harmonic_num = harmonic_num
        self.dim = harmonic_num + 1
        self.sampling_rate = samp_rate
        self.voiced_threshold = voiced_threshold
        # TODO(synk): set out_dtype=jnp.bfloat16 on v5e if the downstream NSF
        # filter accepts bf16 (halves HBM store bytes again on the store-bound chip).
        self.out_dtype = out_dtype

    def __call__(self, f0, upp, key):
        B, L = f0.shape
        dim = self.dim
        upp = int(upp)
        K = upp * dim
        Kp = _round_up(K, 128)                 # lane-dense, unmasked vst
        sr = float(self.sampling_rate)
        f0 = f0.astype(jnp.float32)

        # ---- JAX glue: sequential per-frame phase accumulation (cumsum) ----
        # mirrors: rad2 = fmod(rad[...,-1:]+0.5,1)-0.5; cumsum; fmod; shift
        rad_last = f0 / sr * float(upp)                          # (B, L)
        rad2 = jnp.fmod(rad_last + 0.5, 1.0) - 0.5
        rad_acc = jnp.fmod(jnp.cumsum(rad2, axis=1), 1.0)
        phase_off = jnp.pad(rad_acc[:, :-1], ((0, 0), (1, 0)))   # (B, L)

        # ---- random initial phases (fundamental fixed at 0) + noise seed ----
        k_ini, k_seed = jax.random.split(key)
        rand_ini = jax.random.uniform(k_ini, (1, 1, dim), dtype=jnp.float32)
        rand_ini = rand_ini.at[..., 0].set(0.0)
        seed = jax.random.randint(k_seed, (1,), 0, jnp.iinfo(jnp.int32).max,
                                  dtype=jnp.int32)

        # ---- per-lane constants over flattened k = (u, h), padded to Kp ----
        u = jnp.arange(1, upp + 1, dtype=jnp.float32)            # (upp,)
        h = jnp.arange(1, dim + 1, dtype=jnp.float32)            # (dim,)
        c1 = (u[:, None] * h[None, :] / sr).reshape(K)
        c2 = jnp.broadcast_to(h[None, :], (upp, dim)).reshape(K)
        c3 = jnp.broadcast_to(rand_ini.reshape(1, dim), (upp, dim)).reshape(K)
        consts = jnp.stack([c1, c2, c3], axis=0)                 # (3, K)
        consts = jnp.pad(consts, ((0, 0), (0, Kp - K)))[:, None, :]  # (3,1,Kp)

        # ---- tile selection: tl multiple of 8, ~3 MiB output blocks, minimal
        #      L padding, and >= ~4 grid steps so both v7x TCs get work ----
        row_bytes = Kp * 4
        tl_cap = max(8, ((3 * 1024 * 1024) // row_bytes) // 8 * 8)
        tl_max = min(tl_cap, _round_up(L, 8))

        def badness(c):
            lp = _round_up(L, c)
            nt_c = B * (lp // c)
            return (lp - L, max(0, 4 - nt_c), -c)

        tl = min(range(8, tl_max + 1, 8), key=badness)
        Lp = _round_up(L, tl)
        nt = B * (Lp // tl)                                      # 1-D parallel grid

        f0_t = jnp.pad(f0, ((0, 0), (0, Lp - L))).reshape(nt, tl, 1)
        ph_t = jnp.pad(phase_off, ((0, 0), (0, Lp - L))).reshape(nt, tl, 1)

        kernel = _make_sine_kernel(self.sine_amp, self.noise_std,
                                   self.voiced_threshold, tl, Kp)

        n = nt * tl * Kp
        cost = pl.CostEstimate(
            flops=30 * n,                     # FMA chain + int hash + epilogue
            transcendentals=n,                # one sin per element
            bytes_accessed=n * np.dtype(self.out_dtype).itemsize
            + (f0_t.size + ph_t.size + consts.size + seed.size) * 4)

        out = pl.pallas_call(
            kernel,
            out_shape=jax.ShapeDtypeStruct((nt, tl, Kp), self.out_dtype),
            grid=(nt,),
            in_specs=[
                pl.BlockSpec(memory_space=pltpu.MemorySpace.SMEM),   # seed
                pl.BlockSpec((1, tl, 1), lambda t: (t, 0, 0)),       # f0
                pl.BlockSpec((1, tl, 1), lambda t: (t, 0, 0)),       # phase_off
                pl.BlockSpec((3, 1, Kp), lambda t: (0, 0, 0)),       # consts
            ],
            out_specs=pl.BlockSpec((1, tl, Kp), lambda t: (t, 0, 0)),
            compiler_params=pltpu.CompilerParams(
                dimension_semantics=("parallel",),
                vmem_limit_bytes=32 * 1024 * 1024),
            cost_estimate=cost,
        )(seed, f0_t, ph_t, consts)

        # Row-major reshapes; the slices are no-ops when K%128==0 and L%tl==0.
        out = out.reshape(B, Lp, Kp)
        if Kp != K:
            out = out[..., :K]
        out = out.reshape(B, Lp * upp, dim)
        if Lp != L:
            out = out[:, :L * upp]

        self._Lp, self._Kp = Lp, Kp        # exposed so tests can rebuild noise
        return out, rand_ini, seed


def sine_gen_ref(f0, upp, rand_ini, seed, samp_rate, dim,
                 sine_amp, noise_std, voiced_threshold, Lp, Kp):
    """Pure-JAX mirror of the PyTorch forward (same hash-derived noise)."""
    f0 = f0.astype(jnp.float32)[..., None]                       # (B, L, 1)
    B, L, _ = f0.shape
    upp = int(upp)
    rad = f0 / samp_rate * jnp.arange(1, upp + 1, dtype=jnp.float32)   # (B,L,upp)
    rad2 = jnp.fmod(rad[..., -1:] + 0.5, 1.0) - 0.5
    rad_acc = jnp.fmod(jnp.cumsum(rad2, axis=1), 1.0)
    rad = rad + jnp.pad(rad_acc[:, :-1, :], ((0, 0), (1, 0), (0, 0)))
    rad = rad.reshape(B, -1, 1)
    rad = rad * jnp.arange(1, dim + 1, dtype=jnp.float32).reshape(1, 1, -1)
    rad = rad + rand_ini
    sines = jnp.sin(2.0 * np.pi * rad) * sine_amp
    uv = (f0 > voiced_threshold).astype(jnp.float32)
    uv = jnp.repeat(uv, upp, axis=1)                             # nearest upsample
    noise_amp = uv * noise_std + (1.0 - uv) * (sine_amp / 3.0)

    # Reconstruct exactly the noise the kernel generated (same hash, same idx).
    b = jnp.arange(B, dtype=jnp.int32)
    l = jnp.arange(L, dtype=jnp.int32)
    u = jnp.arange(upp, dtype=jnp.int32)
    h = jnp.arange(dim, dtype=jnp.int32)
    row = b[:, None] * Lp + l[None, :]                           # (B, L)
    col = u[:, None] * dim + h[None, :]                          # (upp, dim)
    idx = row[:, :, None, None] * Kp + col[None, None, :, :]     # (B,L,upp,dim)
    idx = idx.reshape(B, L * upp, dim).astype(jnp.uint32)
    z = _hash_gauss(idx, seed[0].astype(jnp.uint32))
    return sines * uv + noise_amp * z


if __name__ == "__main__":
    key = jax.random.PRNGKey(0)
    B, L, upp = 2, 16, 16
    harmonic_num = 7                      # dim = 8 -> K = upp*dim = 128 lanes
    samp_rate = 16000

    k_f0, k_voiced, k_rng = jax.random.split(key, 3)
    f0 = jax.random.uniform(k_f0, (B, L), minval=80.0, maxval=400.0)
    voiced = jax.random.bernoulli(k_voiced, 0.7, (B, L))
    f0 = jnp.where(voiced, f0, 0.0).astype(jnp.float32)

    gen = SineGenPallas(samp_rate, harmonic_num=harmonic_num)
    out, rand_ini, seed = gen(f0, upp, k_rng)
    out = jax.block_until_ready(out)

    ref = sine_gen_ref(f0, upp, rand_ini, seed, samp_rate, gen.dim,
                       gen.sine_amp, gen.noise_std, gen.voiced_threshold,
                       gen._Lp, gen._Kp)
    np.testing.assert_allclose(np.asarray(out), np.asarray(ref),
                               rtol=1e-4, atol=1e-4)
    assert out.shape == (B, L * upp, harmonic_num + 1)
    print("KERNEL_OK")
</pallas_src>

<mosaic_0001>
module attributes {stable_mosaic.version = 11 : i64} {
  func.func @kernel(%arg0: i32, %arg1: memref<1xi32, #tpu.memory_space<smem>>, %arg2: memref<1x8x1xf32, #tpu.memory_space<vmem>>, %arg3: memref<1x8x1xf32, #tpu.memory_space<vmem>>, %arg4: memref<3x1x128xf32, #tpu.memory_space<vmem>>, %arg5: memref<1x8x128xf32, #tpu.memory_space<vmem>>) attributes {dimension_semantics = [#tpu.dimension_semantics<parallel>], iteration_bounds = array<i64: 4>, scalar_prefetch = 0 : i64, scratch_operands = 0 : i64, tpu.core_type = #tpu.core_type<tc>, window_params = [{transform_indices = @transform_0, window_bounds = array<i64: 1>}, {transform_indices = @transform_1, window_bounds = array<i64: 1, 8, 1>}, {transform_indices = @transform_2, window_bounds = array<i64: 1, 8, 1>}, {pipeline_mode = #tpu.pipeline_mode<synchronous>, transform_indices = @transform_3, window_bounds = array<i64: 3, 1, 128>}, {transform_indices = @transform_4, window_bounds = array<i64: 1, 8, 128>}]} {
    %c0 = arith.constant 0 : index
    %c0_0 = arith.constant 0 : index
    %c0_1 = arith.constant 0 : index
    %0 = vector.load %arg2[%c0, %c0_0, %c0_1] : memref<1x8x1xf32, #tpu.memory_space<vmem>>, vector<1x8x1xf32>
    %1 = vector.shape_cast %0 : vector<1x8x1xf32> to vector<8x1xf32>
    %c0_2 = arith.constant 0 : index
    %c0_3 = arith.constant 0 : index
    %c0_4 = arith.constant 0 : index
    %2 = vector.load %arg3[%c0_2, %c0_3, %c0_4] : memref<1x8x1xf32, #tpu.memory_space<vmem>>, vector<1x8x1xf32>
    %3 = vector.shape_cast %2 : vector<1x8x1xf32> to vector<8x1xf32>
    %c0_5 = arith.constant 0 : index
    %c0_6 = arith.constant 0 : index
    %c0_7 = arith.constant 0 : index
    %4 = vector.load %arg4[%c0_5, %c0_6, %c0_7] : memref<3x1x128xf32, #tpu.memory_space<vmem>>, vector<1x1x128xf32>
    %5 = vector.shape_cast %4 : vector<1x1x128xf32> to vector<1x128xf32>
    %c1 = arith.constant 1 : index
    %c0_8 = arith.constant 0 : index
    %c0_9 = arith.constant 0 : index
    %6 = vector.load %arg4[%c1, %c0_8, %c0_9] : memref<3x1x128xf32, #tpu.memory_space<vmem>>, vector<1x1x128xf32>
    %7 = vector.shape_cast %6 : vector<1x1x128xf32> to vector<1x128xf32>
    %c2 = arith.constant 2 : index
    %c0_10 = arith.constant 0 : index
    %c0_11 = arith.constant 0 : index
    %8 = vector.load %arg4[%c2, %c0_10, %c0_11] : memref<3x1x128xf32, #tpu.memory_space<vmem>>, vector<1x1x128xf32>
    %9 = vector.shape_cast %8 : vector<1x1x128xf32> to vector<1x128xf32>
    %10 = vector.broadcast %1 : vector<8x1xf32> to vector<8x128xf32>
    %11 = vector.broadcast %5 : vector<1x128xf32> to vector<8x128xf32>
    %12 = arith.mulf %10, %11 : vector<8x128xf32>
    %13 = vector.broadcast %3 : vector<8x1xf32> to vector<8x128xf32>
    %14 = vector.broadcast %7 : vector<1x128xf32> to vector<8x128xf32>
    %15 = arith.mulf %13, %14 : vector<8x128xf32>
    %16 = arith.addf %12, %15 : vector<8x128xf32>
    %17 = vector.broadcast %9 : vector<1x128xf32> to vector<8x128xf32>
    %18 = arith.addf %16, %17 : vector<8x128xf32>
    %19 = math.floor %18 : vector<8x128xf32>
    %20 = arith.subf %18, %19 : vector<8x128xf32>
    %cst = arith.constant 6.28318548 : f32
    %21 = vector.broadcast %cst : f32 to vector<8x128xf32>
    %22 = arith.mulf %21, %20 : vector<8x128xf32>
    %23 = math.sin %22 : vector<8x128xf32>
    %cst_12 = arith.constant 1.000000e-01 : f32
    %24 = vector.broadcast %cst_12 : f32 to vector<8x128xf32>
    %25 = arith.mulf %23, %24 : vector<8x128xf32>
    %cst_13 = arith.constant 0.000000e+00 : f32
    %26 = vector.broadcast %cst_13 : f32 to vector<8x1xf32>
    %27 = arith.cmpf ogt, %1, %26 : vector<8x1xf32>
    %28 = arith.extui %27 : vector<8x1xi1> to vector<8x1xi32>
    %29 = arith.sitofp %28 : vector<8x1xi32> to vector<8x1xf32>
    %cst_14 = arith.constant 3.000000e-03 : f32
    %30 = vector.broadcast %cst_14 : f32 to vector<8x1xf32>
    %31 = arith.mulf %29, %30 : vector<8x1xf32>
    %cst_15 = arith.constant 1.000000e+00 : f32
    %32 = vector.broadcast %cst_15 : f32 to vector<8x1xf32>
    %33 = arith.subf %32, %29 : vector<8x1xf32>
    %cst_16 = arith.constant 0.0333333351 : f32
    %34 = vector.broadcast %cst_16 : f32 to vector<8x1xf32>
    %35 = arith.mulf %33, %34 : vector<8x1xf32>
    %36 = arith.addf %31, %35 : vector<8x1xf32>
    %37 = tpu.iota {dimensions = array<i32: 0>} : vector<8x128xi32>
    %38 = tpu.iota {dimensions = array<i32: 1>} : vector<8x128xi32>
    %c8_i32 = arith.constant 8 : i32
    %39 = arith.muli %arg0, %c8_i32 : i32
    %40 = vector.broadcast %39 : i32 to vector<8x128xi32>
    %41 = arith.addi %40, %37 : vector<8x128xi32>
    %c128_i32 = arith.constant 128 : i32
    %42 = vector.broadcast %c128_i32 : i32 to vector<8x128xi32>
    %43 = arith.muli %41, %42 : vector<8x128xi32>
    %44 = arith.addi %43, %38 : vector<8x128xi32>
    %c0_17 = arith.constant 0 : index
    %45 = memref.load %arg1[%c0_17] : memref<1xi32, #tpu.memory_space<smem>>
    %46 = vector.broadcast %45 : i32 to vector<8x128xi32>
    %47 = arith.xori %44, %46 : vector<8x128xi32>
    %c16_i32 = arith.constant 16 : i32
    %48 = vector.broadcast %c16_i32 : i32 to vector<8x128xi32>
    %49 = arith.shrui %47, %48 : vector<8x128xi32>
    %50 = arith.xori %47, %49 : vector<8x128xi32>
    %c2146121005_i32 = arith.constant 2146121005 : i32
    %51 = vector.broadcast %c2146121005_i32 : i32 to vector<8x128xi32>
    %52 = arith.muli %50, %51 : vector<8x128xi32>
    %c15_i32 = arith.constant 15 : i32
    %53 = vector.broadcast %c15_i32 : i32 to vector<8x128xi32>
    %54 = arith.shrui %52, %53 : vector<8x128xi32>
    %55 = arith.xori %52, %54 : vector<8x128xi32>
    %c-2073254261_i32 = arith.constant -2073254261 : i32
    %56 = vector.broadcast %c-2073254261_i32 : i32 to vector<8x128xi32>
    %57 = arith.muli %55, %56 : vector<8x128xi32>
    %c16_i32_18 = arith.constant 16 : i32
    %58 = vector.broadcast %c16_i32_18 : i32 to vector<8x128xi32>
    %59 = arith.shrui %57, %58 : vector<8x128xi32>
    %60 = arith.xori %57, %59 : vector<8x128xi32>
    %c2047_i32 = arith.constant 2047 : i32
    %61 = vector.broadcast %c2047_i32 : i32 to vector<8x128xi32>
    %62 = arith.andi %60, %61 : vector<8x128xi32>
    %63 = arith.sitofp %62 : vector<8x128xi32> to vector<8x128xf32>
    %c11_i32 = arith.constant 11 : i32
    %64 = vector.broadcast %c11_i32 : i32 to vector<8x128xi32>
    %65 = arith.shrui %60, %64 : vector<8x128xi32>
    %c2047_i32_19 = arith.constant 2047 : i32
    %66 = vector.broadcast %c2047_i32_19 : i32 to vector<8x128xi32>
    %67 = arith.andi %65, %66 : vector<8x128xi32>
    %68 = arith.sitofp %67 : vector<8x128xi32> to vector<8x128xf32>
    %c22_i32 = arith.constant 22 : i32
    %69 = vector.broadcast %c22_i32 : i32 to vector<8x128xi32>
    %70 = arith.shrui %60, %69 : vector<8x128xi32>
    %71 = arith.sitofp %70 : vector<8x128xi32> to vector<8x128xf32>
    %cst_20 = arith.constant 4.8828125E-4 : f32
    %72 = vector.broadcast %cst_20 : f32 to vector<8x128xf32>
    %73 = arith.mulf %63, %72 : vector<8x128xf32>
    %cst_21 = arith.constant 4.8828125E-4 : f32
    %74 = vector.broadcast %cst_21 : f32 to vector<8x128xf32>
    %75 = arith.mulf %68, %74 : vector<8x128xf32>
    %76 = arith.addf %73, %75 : vector<8x128xf32>
    %cst_22 = arith.constant 9.765625E-4 : f32
    %77 = vector.broadcast %cst_22 : f32 to vector<8x128xf32>
    %78 = arith.mulf %71, %77 : vector<8x128xf32>
    %79 = arith.addf %76, %78 : vector<8x128xf32>
    %cst_23 = arith.constant 1.500000e+00 : f32
    %80 = vector.broadcast %cst_23 : f32 to vector<8x128xf32>
    %81 = arith.subf %79, %80 : vector<8x128xf32>
    %cst_24 = arith.constant 2.000000e+00 : f32
    %82 = vector.broadcast %cst_24 : f32 to vector<8x128xf32>
    %83 = arith.mulf %81, %82 : vector<8x128xf32>
    %84 = vector.broadcast %29 : vector<8x1xf32> to vector<8x128xf32>
    %85 = arith.mulf %25, %84 : vector<8x128xf32>
    %86 = vector.broadcast %36 : vector<8x1xf32> to vector<8x128xf32>
    %87 = arith.mulf %86, %83 : vector<8x128xf32>
    %88 = arith.addf %85, %87 : vector<8x128xf32>
    %c0_25 = arith.constant 0 : index
    %c0_26 = arith.constant 0 : index
    %c0_27 = arith.constant 0 : index
    %89 = vector.load %arg5[%c0_25, %c0_26, %c0_27] : memref<1x8x128xf32, #tpu.memory_space<vmem>>, vector<1x8x128xf32>
    %90 = vector.shape_cast %89 : vector<1x8x128xf32> to vector<8x128xf32>
    %91 = vector.shape_cast %88 : vector<8x128xf32> to vector<1x8x128xf32>
    tpu.vector_store %arg5[%c0_25, %c0_26, %c0_27], %91 {strides = array<i32>} : memref<1x8x128xf32, #tpu.memory_space<vmem>>, vector<1x8x128xf32>,
    return
  }
  func.func @transform_0(%arg0: i32) -> i32 {
    %c0_i32 = arith.constant 0 : i32
    %c0_i32_0 = arith.constant 0 : i32
    return %c0_i32 : i32
  }
  func.func @transform_1(%arg0: i32) -> (i32, i32, i32) {
    %c0_i32 = arith.constant 0 : i32
    %c0_i32_0 = arith.constant 0 : i32
    %c0_i32_1 = arith.constant 0 : i32
    return %arg0, %c0_i32, %c0_i32_0 : i32, i32, i32
  }
  func.func @transform_2(%arg0: i32) -> (i32, i32, i32) {
    %c0_i32 = arith.constant 0 : i32
    %c0_i32_0 = arith.constant 0 : i32
    %c0_i32_1 = arith.constant 0 : i32
    return %arg0, %c0_i32, %c0_i32_0 : i32, i32, i32
  }
  func.func @transform_3(%arg0: i32) -> (i32, i32, i32) {
    %c0_i32 = arith.constant 0 : i32
    %c0_i32_0 = arith.constant 0 : i32
    %c0_i32_1 = arith.constant 0 : i32
    %c0_i32_2 = arith.constant 0 : i32
    return %c0_i32, %c0_i32_0, %c0_i32_1 : i32, i32, i32
  }
  func.func @transform_4(%arg0: i32) -> (i32, i32, i32) {
    %c0_i32 = arith.constant 0 : i32
    %c0_i32_0 = arith.constant 0 : i32
    %c0_i32_1 = arith.constant 0 : i32
    return %arg0, %c0_i32, %c0_i32_0 : i32, i32, i32
  }
}

</mosaic_0001>

<bundles_post_ra>
// kernel: tpu_custom_call.1
= control target key start
LH: loop header
LB: loop body
LE: loop exit
PB: predicated region body
PF: predicated region fallthrough
CT: control target
= control target key end

     0   :  { %s896_s0 = inlined_call_operand.<no memory space> [shape: s32[1], index: 0, kind: input, shape index: {}]   ;;  %s897_s1 = inlined_call_operand.vmem [shape: f32[4,8,1], index: 1, kind: input, shape index: {}]   ;;  %s898_s2 = inlined_call_operand.vmem [shape: f32[4,8,1], index: 2, kind: input, shape index: {}]   ;;  %s899_s3 = inlined_call_operand.vmem [shape: f32[3,1,128], index: 3, kind: input, shape index: {}]   ;;  %s900_s4 = inlined_call_operand.hbm [shape: f32[4,8,128], index: 4, kind: output, shape index: {}]  }
   0x1   :  { %9 = sst [smem:[#allocation2]] %s896_s0 }
   0x2   :  { %10 = vsyncpa [#allocation4], 0 }
   0x3   :  { %12 = vsyncpa [#allocation4 + $0x1], 0  ;;  %s713_s17 = smov 0   ;;  %s715_s18 = smov 0  }
   0x4   :  { %s717_s19 = smov 0   ;;  %s719_s20 = smov 0  }
   0x5 LB: > { %s734_s0 = sadd.s32 4294967295, %s675_s20   ;;  %s542_s21 = sadd.s32 4294967294, %s675_s20   ;;  %s675_s20 = sphi %s719_s20, %s908_s20   ;;  %s671_s19 = sphi %s717_s19, %s907_s19   ;;  %s667_s18 = sphi %s715_s18, %s906_s18   ;;  %s663_s17 = sphi %s713_s17, %s905_s17  }
   0x6   : > { %s738_s22 = sadd.s32 1, %s675_s20   ;;  %s119_s23 = sadd.s32 1, %s671_s19 }
   0x7   : > { %s116_s24 = ssub.s32 %s675_s20, %s738_s22  ;;  %p129_p0 = scmp.ne.s32.totalorder %s671_s19, %s667_s18 }
   0x8   : > { %p117_p1 = scmp.eq.s32.totalorder %s116_s24, 0  ;;  %p130_p2 = scmp.eq.s32.totalorder %s734_s0, 3 }
   0x9   : > { %p135_p3 = scmp.ne.s32.totalorder %s667_s18, %s663_s17  ;;  %p136_p4 = scmp.eq.s32.totalorder %s542_s21, 3 }
   0xa   : > { %s749_s25 = scalar_select %p117_p1, %s671_s19, %s119_s23  }
   0xb   : > { %p751_p5 = por %p130_p2, %p129_p0  ;;  %p755_p6 = por %p136_p4, %p135_p3 }
   0xc   : > { %p545_p7 = scmp.ge.s32.totalorder %s675_s20, 1  ;;  %p174_p8 = scmp.lt.s32.totalorder %s675_s20, 5 }
   0xe   : > { %p175_p9 = pnand %p545_p7, %p174_p8 }
   0xf   : > { %p203_p10 = scmp.lt.s32.totalorder (!%p175_p9), %s734_s0, 3  ;;  %s555_s16 = sshll.u32 (!%p175_p9), %s734_s0, 3 }
  0x10   : > { %178 = sbr.rel (%p175_p9) target bundleno = 266 (0x10a), region = 36  ;;  %s830_s21 = sld [smem:[#allocation2]] (!%p175_p9) }
  0x11   : > { %s200_s23 = sand.u32 (!%p175_p9), 1, %s667_s18   ;;  %s466_s30 = scalar_lea.hbm (!%p175_p9), %s900_s4, %s555_s16 }
  0x12   : > { %s546_s24 = sshll.u32 (!%p175_p9), %s200_s23, 3  ;;  %s470_s7 = sshll.u32 (!%p175_p9), %s466_s30, 4  ;;  %s471_s7 = int_to_ptr.hbm [resolvable:$true] %s470_s7 }
  0x13   : > { %s202_s5 = scalar_lea.vmem (!%p175_p9), [#allocation3], %s546_s24  ;;  %s456_s8 = scalar_lea.sflag (!%p175_p9), [#allocation4], %s200_s23 }
  0x14   : > { %s633_s12 = scalar_lea.hbm (!%p175_p9), %s900_s4, 32 }
  0x15   : > { %v677_v0 = vmov 0   ;;  %s204_s28 = scalar_select %p203_p10, %s734_s0, 3  ;;  %v678_v2 = vmov 0.0   ;;  %v610_v10 = vld [vmem:[%s899_s3] ss:$0 sm:$0xff]  ;;  %v407_v54 = vlaneseq  ;;  %v412_v63 = vstv %s555_s16 }
  0x16   : > { %608 = vset.pattern.permute.xlu0 %v677_v0  ;;  %609 = vset.pattern.permute.xlu1 %v677_v0  ;;  %v611_v11 = vld [vmem:[%s899_s3 + $0x1] ss:$0 sm:$0xff]  ;;  %v612_v14 = vld [vmem:[%s899_s3 + $0x2] ss:$0 sm:$0xff]  ;;  %v679_v32 = vmov 683565275  }
  0x17   : > { %s547_s29 = sshll.u32 %s204_s28, 3  ;;  %v680_v34 = vmov 2475754826   ;;  %v681_v38 = vmov 2131351028   ;;  %v408_v60 = vshrl.u32 %v407_v54, 7 }
  0x18   : > { %s206_s6 = scalar_lea.vmem %s897_s1, %s547_s29  ;;  %s210_s9 = scalar_lea.vmem %s898_s2, %s547_s29  ;;  %v682_v41 = vmov 2102212464   ;;  %v683_v44 = vmov 920167782   ;;  %v684_v47 = vmov 1326507024  }
  0x19   : > { %v211_v1 = vld [vmem:[%s206_s6] sm:$0xff]  ;;  %s468_s6 = sshll.u32 %s202_s5, 4  ;;  %s469_s6 = int_to_ptr.vmem [resolvable:$true] %s468_s6 }
  0x1a   : > { %220 = vperm.xlu0 %608, %v211_v1   ;;  %vm400_vm0 = vcmp.gt.f32.partialorder %v211_v1, 0.0  ;;  %v212_v7 = vld [vmem:[%s210_s9] sm:$0xff]  ;;  %s627_s9 = sshra.s32 %s471_s7, 4  ;;  %s628_s9 = int_to_ptr.hbm [resolvable:$true] %s627_s9 }
  0x1b   : > { %v554_v3 = vsel %vm400_vm0, 1.0, %v678_v2  ;;  %s629_s0 = scalar_lea.hbm %s628_s9, 8  ;;  %p634_p0 = scmp.lt.s32.totalorder %s628_s9, %s900_s4 }
  0x1c   : > { %443 = vperm.xlu1 %609, %v554_v3   ;;  %v403_v4 = vmul.f32 0.003, %v554_v3  ;;  %v404_v5 = vsub.f32 1.0, %v554_v3  ;;  %p630_p11 = scmp.ne.s32.totalorder %s628_s9, %s629_s0  ;;  %p635_p1 = scmp.lt.s32.totalorder %s633_s12, %s629_s0 }
  0x1e   : > { %v405_v6 = vmul.f32 0.033333335, %v404_v5  ;;  %p631_p12 = pnand %p630_p11, %p751_p5  ;;  %p636_p2 = por %p635_p1, %p634_p0 }
  0x20   : > { %v406_v8 = vadd.f32 %v405_v6, %v403_v4  ;;  %v413_v4 = vadd.s32 %v412_v63, %v408_v60  ;;  %p632_p13 = pneg %p631_p12 }
  0x22   : > { %229 = vperm.xlu0 %608, %v212_v7   ;;  %p637_p3 = pnand %p636_p2, %p632_p13 }
  0x24   : > { %449 = vperm.xlu1 %609, %v406_v8  }
  0x8c   : > { %v221_v9 = vpop.permute.xlu0 %220 }
  0x8d   : > { %v226_v13 = vmul.f32 %v610_v10, %v221_v9 }
  0x94   : > { %v230_v12 = vpop.permute.xlu0 %229 }
  0x95   : > { %v235_v15 = vmul.f32 %v611_v11, %v230_v12  ;;  %v410_v11 = vand.u32 127, %v407_v54  ;;  %v414_v12 = vmul.u32 128, %v413_v4 }
  0x97   : > { %v236_v16 = vadd.f32 %v235_v15, %v226_v13 }
  0x99   : > { %v240_v17 = vadd.f32 %v612_v14, %v236_v16 }
  0x9b   : > { %v241_v18 = vfloor.f32 %v240_v17 }
  0x9d   : > { %v242_v19 = vsub.f32 %v240_v17, %v241_v18 }
  0x9f   : > { %v780_v20 = vmul.f32 6.2831855, %v242_v19 }
  0xa1   : > { %v247_v21 = vand.u32 2139095040, %v780_v20  ;;  %v244_v22 = vand.u32 2147483647, %v780_v20  ;;  %vm246_vm13 = vcmp.lt.s32.totalorder %v780_v20, 0 }
  0xa3   : > { %v248_v23 = vshrl.u32 %v247_v21, 23  ;;  %v251_v25 = vand.u32 8388607, %v244_v22  ;;  %vm853_vm14 = vcmp.le.f32.partialorder %v244_v22, 0.7853982 }
  0xa5   : > { %v551_v24 = vadd.s32 4294967169, %v248_v23  ;;  %v252_v28 = vor.u32 8388608, %v251_v25 }
  0xa7   : > { %v254_v26 = vadd.s32 1, %v551_v24  ;;  %v791_v36 = vshll.u32 %v252_v28, 8 }
  0xa9   : > { %vm255_vm1 = vcmp.gt.s32.totalorder %v254_v26, 0  ;;  %v293_v57 = vand.u32 65535, %v791_v36  ;;  %v294_v3 = vshrl.u32 %v791_v36, 16 }
  0xaa   : > { %v256_v27 = vsel %vm255_vm1, %v254_v26, 0  ;;  %v415_v26 = vadd.s32 %v414_v12, %v410_v11 }
  0xab   : > { %v258_v29 = vand.u32 31, %v256_v27  ;;  %v788_v31 = vshrl.u32 %v256_v27, 5 }
  0xad   : > { %v786_v30 = vsub.s32 32, %v258_v29  ;;  %v261_v33 = vshll.u32 %v679_v32, %v258_v29  ;;  %v264_v35 = vshll.u32 %v680_v34, %v258_v29  ;;  %v267_v40 = vshll.u32 %v681_v38, %v258_v29 }
  0xae   : > { %v270_v43 = vshll.u32 %v682_v41, %v258_v29  ;;  %v273_v46 = vshll.u32 %v683_v44, %v258_v29  ;;  %vm276_vm2 = vcmp.lt.s32.totalorder %v788_v31, 1  ;;  %vm279_vm3 = vcmp.lt.s32.totalorder %v788_v31, 4 }
  0xaf   : > { %v262_v37 = vshrl.u32 %v680_v34, %v786_v30  ;;  %v265_v39 = vshrl.u32 %v681_v38, %v786_v30  ;;  %v268_v42 = vshrl.u32 %v682_v41, %v786_v30  ;;  %v271_v45 = vshrl.u32 %v683_v44, %v786_v30 }
  0xb0   : > { %v274_v48 = vshrl.u32 %v684_v47, %v786_v30  ;;  %vm278_vm4 = vcmp.lt.s32.totalorder %v788_v31, 3  ;;  %vm277_vm5 = vcmp.lt.s32.totalorder %v788_v31, 2  ;;  %v417_v29 = vstv %s830_s21 }
  0xb1   : > { %v798_v49 = vor.u32 %v262_v37, %v261_v33  ;;  %v800_v50 = vor.u32 %v265_v39, %v264_v35  ;;  %v269_v51 = vor.u32 %v268_v42, %v267_v40  ;;  %v272_v52 = vor.u32 %v271_v45, %v270_v43 }
  0xb2   : > { %v275_v53 = vor.u32 %v274_v48, %v273_v46  ;;  %v260_v33 = vshrl.u32 %v679_v32, %v786_v30  ;;  %v418_v43 = vxor.u32 %v417_v29, %v415_v26 }
  0xb3   : > { %v284_v55 = vsel %vm276_vm2, %v798_v49, %v800_v50  ;;  %v288_v56 = vsel %vm276_vm2, %v800_v50, %v269_v51  ;;  %v285_v58 = vsel %vm279_vm3, %v272_v52, 920167782  ;;  %v281_v37 = vsel %vm279_vm3, %v269_v51, 2102212464 }
  0xb4   : > { %v289_v59 = vsel %vm279_vm3, %v275_v53, 1326507024  ;;  %v286_v61 = vsel %vm278_vm4, %v269_v51, %v285_v58  ;;  %v280_v30 = vsel %vm276_vm2, %v260_v33, %v798_v49  ;;  %v282_v32 = vsel %vm278_vm4, %v800_v50, %v281_v37 }
  0xb5   : > { %v290_v62 = vsel %vm278_vm4, %v272_v52, %v289_v59  ;;  %v287_v1 = vsel %vm277_vm5, %v284_v55, %v286_v61  ;;  %v419_v54 = vshrl.u32 %v418_v43, 16  ;;  %vm387_vm2 = vweird.f32 %v780_v20 }
  0xb6   : > { %v291_v2 = vsel %vm277_vm5, %v288_v56, %v290_v62  ;;  %v317_v7 = vand.u32 65535, %v287_v1  ;;  %v318_v8 = vshrl.u32 %v287_v1, 16 }
  0xb7   : > { %v295_v5 = vand.u32 65535, %v291_v2  ;;  %v296_v6 = vshrl.u32 %v291_v2, 16  ;;  %v420_v49 = vxor.u32 %v419_v54, %v418_v43 }
  0xb8   : > { %v320_v13 = vmul.u32 %v318_v8, %v293_v57  ;;  %v321_v14 = vmul.u32 %v317_v7, %v294_v3  ;;  %v319_v19 = vmul.u32 %v317_v7, %v293_v57  ;;  %v322_v21 = vmul.u32 %v318_v8, %v294_v3 }
  0xb9   : > { %v298_v9 = vmul.u32 %v296_v6, %v293_v57  ;;  %v299_v10 = vmul.u32 %v295_v5, %v294_v3  ;;  %v297_v15 = vmul.u32 %v295_v5, %v293_v57  ;;  %v300_v16 = vmul.u32 %v296_v6, %v294_v3 }
  0xba   : > { %v323_v23 = vshll.u32 %v320_v13, 16  ;;  %v325_v25 = vshll.u32 %v321_v14, 16  ;;  %v324_v44 = vshrl.u32 %v320_v13, 16  ;;  %v326_v48 = vshrl.u32 %v321_v14, 16 }
  0xbb   : > { %v301_v17 = vshll.u32 %v298_v9, 16  ;;  %v303_v18 = vshll.u32 %v299_v10, 16  ;;  %v302_v40 = vshrl.u32 %v298_v9, 16  ;;  %v304_v46 = vshrl.u32 %v299_v10, 16 }
  0xbc   : > { %vm327_vm7 = vc.u32 %v319_v19, %v323_v23  ;;  %v329_v28 = vadd.s32 %v323_v23, %v319_v19  ;;  %v421_v50 = vmul.u32 2146121005, %v420_v49 }
  0xbd   : > { %vm305_vm6 = vc.u32 %v297_v15, %v301_v17  ;;  %v307_v24 = vadd.s32 %v301_v17, %v297_v15  ;;  %v328_v35 = vsel %vm327_vm7, 1, %v677_v0 }
  0xbe   : > { %v306_v27 = vsel %vm305_vm6, 1, %v677_v0  ;;  %v330_v39 = vadd.s32 %v328_v35, %v322_v21  ;;  %vm331_vm9 = vc.u32 %v329_v28, %v325_v25  ;;  %v333_v53 = vadd.s32 %v329_v28, %v325_v25 }
  0xbf   : > { %v308_v34 = vadd.s32 %v306_v27, %v300_v16  ;;  %vm309_vm8 = vc.u32 %v307_v24, %v303_v18  ;;  %v332_v42 = vsel %vm331_vm9, 1, %v677_v0  ;;  %v422_v63 = vshrl.u32 %v421_v50, 15 }
  0xc0   : > { %v310_v38 = vsel %vm309_vm8, 1, %v677_v0  ;;  %v334_v45 = vadd.s32 %v332_v42, %v330_v39  ;;  %v283_v0 = vsel %vm277_vm5, %v280_v30, %v282_v32 }
  0xc1   : > { %v312_v41 = vadd.s32 %v310_v38, %v308_v34  ;;  %v337_v57 = vmul.u32 %v791_v36, %v283_v0  ;;  %v423_v3 = vxor.u32 %v422_v63, %v421_v50 }
  0xc2   : > { %v335_v51 = vadd.s32 %v334_v45, %v324_v44 }
  0xc3   : > { %v313_v47 = vadd.s32 %v312_v41, %v302_v40  ;;  %v424_v5 = vmul.u32 2221713035, %v423_v3 }
  0xc4   : > { %v336_v55 = vadd.s32 %v335_v51, %v326_v48 }
  0xc5   : > { %v314_v52 = vadd.s32 %v313_v47, %v304_v46  ;;  %v425_v8 = vshrl.u32 %v424_v5, 16 }
  0xc6   : > { %v340_v56 = vadd.s32 1, %v336_v55 }
  0xc7   : > { %vm339_vm10 = vc.u32 %v314_v52, %v333_v53  ;;  %v338_v36 = vadd.s32 %v333_v53, %v314_v52  ;;  %v426_v14 = vxor.u32 %v425_v8, %v424_v5 }
  0xc8   : > { %v341_v58 = vsel %vm339_vm10, %v340_v56, %v336_v55  ;;  %v444_v55 = vpop.permute.xlu1 %443 }
  0xc9   : > { %v342_v59 = vadd.s32 %v341_v58, %v337_v57  ;;  %v429_v18 = vshrl.u32 %v426_v14, 11  ;;  %v427_v24 = vand.u32 2047, %v426_v14  ;;  %v432_v37 = vshrl.u32 %v426_v14, 22 }
  0xcb   : > { %v343_v60 = vadd.s32 536870912, %v342_v59  ;;  %v430_v25 = vand.u32 2047, %v429_v18  ;;  %v428_v34 = vcvt.s32.f32 %v427_v24  ;;  %v433_v42 = vcvt.s32.f32 %v432_v37 }
  0xcd   : > { %v344_v61 = vshrl.u32 %v343_v60, 30  ;;  %v431_v35 = vcvt.s32.f32 %v430_v25  ;;  %v434_v43 = vmul.f32 0.00048828125, %v428_v34  ;;  %v437_v48 = vmul.f32 0.0009765625, %v433_v42 }
  0xcf   : > { %v345_v62 = vshll.u32 %v344_v61, 30  ;;  %v368_v29 = vsub.s32 4, %v344_v61  ;;  %v435_v44 = vmul.f32 0.00048828125, %v431_v35 }
  0xd1   : > { %v346_v1 = vsub.s32 %v342_v59, %v345_v62  ;;  %v369_v41 = vsel %vm246_vm13, %v368_v29, %v344_v61  ;;  %v436_v47 = vadd.f32 %v435_v44, %v434_v43 }
  0xd2   : > { %v371_v30 = vsel %vm853_vm14, 0, %v369_v41 }
  0xd3   : > { %vm347_vm11 = vcmp.lt.s32.totalorder %v346_v1, 0  ;;  %v348_v2 = vsub.s32 0, %v346_v1  ;;  %v388_v53 = vadd.s32 3, %v371_v30  ;;  %v438_v56 = vadd.f32 %v437_v48, %v436_v47 }
  0xd5   : > { %v349_v4 = vsel %vm347_vm11, %v348_v2, %v346_v1  ;;  %v389_v58 = vand.u32 3, %v388_v53  ;;  %v556_v50 = vadd.f32 -1.5, %v438_v56 }
  0xd6   : > { %v350_v31 = vclz %v349_v4  ;;  %v450_v4 = vpop.permute.xlu1 %449 }
  0xd7   : > { %vm391_vm15 = vcmp.eq.s32.totalorder %v389_v58, 0  ;;  %vm394_vm0 = vcmp.eq.s32.totalorder %v389_v58, 2  ;;  %vm390_vm1 = vcmp.lt.s32.totalorder %v389_v58, 2  ;;  %v440_v2 = vmul.f32 2.0, %v556_v50 }
  0xd8   : > { %v552_v6 = vadd.s32 4294967294, %v350_v31 }
  0xda   : > { %vm553_vm12 = vcmp.lt.s32.totalorder %v552_v6, 0 }
  0xdb   : > { %v353_v7 = vsel %vm553_vm12, 0, %v552_v6  ;;  %v452_v6 = vmul.f32 %v450_v4, %v440_v2 }
  0xdc   : > { %v354_v9 = vsub.s32 32, %v353_v7  ;;  %v358_v10 = vsub.s32 4294967266, %v353_v7  ;;  %v355_v11 = vshll.u32 %v346_v1, %v353_v7 }
  0xde   : > { %v356_v12 = vshrl.u32 %v338_v36, %v354_v9  ;;  %v359_v13 = vadd.s32 127, %v358_v10 }
  0xe0   : > { %v357_v15 = vor.u32 %v356_v12, %v355_v11  ;;  %v360_v16 = vshll.u32 %v359_v13, 23 }
  0xe2   : > { %v361_v17 = vor.u32 4788187, %v360_v16  ;;  %v364_v21 = vcvt.s32.f32 %v357_v15 }
  0xe4   : > { %v362_v19 = vand.u32 2147483647, %v361_v17 }
  0xe6   : > { %v365_v23 = vmul.f32 %v364_v21, %v362_v19 }
  0xe8   : > { %v366_v26 = vxor.u32 2147483648, %v365_v23 }
  0xea   : > { %v367_v28 = vsel %vm246_vm13, %v366_v26, %v365_v23 }
  0xeb   : > { %v370_v33 = vsel %vm853_vm14, %v780_v20, %v367_v28 }
  0xec   : > { %v372_v38 = vmul.f32 %v370_v33, %v370_v33 }
  0xee   : > { %v373_v39 = vmul.f32 -0.001358992, %v372_v38  ;;  %v380_v40 = vmul.f32 -0.00019511016, %v372_v38 }
  0xf0   : > { %v374_v22 = vadd.f32 0.041655596, %v373_v39  ;;  %v381_v45 = vadd.f32 0.008332121, %v380_v40 }
  0xf2   : > { %v375_v32 = vmul.f32 %v374_v22, %v372_v38  ;;  %v382_v46 = vmul.f32 %v381_v45, %v372_v38 }
  0xf4   : > { %v376_v51 = vadd.f32 -0.4999988, %v375_v32  ;;  %v383_v52 = vadd.f32 -0.16666654, %v382_v46 }
  0xf6   : > { %v377_v54 = vmul.f32 %v376_v51, %v372_v38  ;;  %v384_v0 = vmul.f32 %v383_v52, %v372_v38 }
  0xf8   : > { %v378_v57 = vadd.f32 1.0, %v377_v54  ;;  %v385_v49 = vadd.f32 1.0, %v384_v0 }
  0xfa   : > { %v386_v59 = vmul.f32 %v385_v49, %v370_v33  ;;  %v395_v60 = vxor.u32 2147483648, %v378_v57 }
  0xfc   : > { %v392_v61 = vxor.u32 2147483648, %v386_v59  ;;  %v396_v63 = vsel %vm394_vm0, %v395_v60, %v386_v59 }
  0xfe   : > { %v393_v62 = vsel %vm391_vm15, %v378_v57, %v392_v61 }
  0xff   : > { %v397_v1 = vsel %vm390_vm1, %v393_v62, %v396_v63 }
 0x100   : > { %v398_v3 = vsel %vm387_vm2, nan, %v397_v1 }
 0x101   : > { %v399_v31 = vmul.f32 0.1, %v398_v3 }
 0x103   : > { %v446_v5 = vmul.f32 %v444_v55, %v399_v31 }
 0x105   : > { %v453_v7 = vadd.f32 %v452_v6, %v446_v5 }
 0x107   : > { %454 = vst [vmem:[%s202_s5] sm:$0xff] %v453_v7 }
 0x108   : > { %640 = shalt.err (!%p637_p3)
}
 0x109   : > { %561 = dma.vmem_to_hbm [thread:$0]  (%p751_p5), %s469_s6, 128, %s471_s7, %s456_s8  }
 0x10a PF: > { %p567_p4 = scmp.ge.s32.totalorder %s675_s20, 2  ;;  %s482_s15 = sand.u32 1, %s663_s17  }
 0x10b   : > { %s483_s16 = scalar_lea.sflag [#allocation4], %s482_s15 }
 0x10c   : > { %p564_p7 = pnand %p567_p4, %p755_p6 }
 0x10e   : > { %p565_p8 = pneg %p564_p7 }
 0x110   : > { %658 = dma.done.wait (%p565_p8), %s483_s16, 128  }
 0x111   : > { %660 = vsyncadd (%p565_p8), %s483_s16, 4294967168  ;;  %p15_p9 = scmp.ge.s32.totalorder %s738_s22, 6   ;;  %s905_s17 = smov %s667_s18 }
 0x112   : > { %s906_s18 = smov %s671_s19  ;;  %s907_s19 = smov %s749_s25 }
 0x113   : > { %s908_s20 = smov %s738_s22  ;;  %17 = sbr.rel (!%p15_p9) target bundleno = 5 (0x5), region = 76 }
 0x118   :  { %489 = vsyncpa [#allocation4], 1 }
 0x119   :  { %491 = vsyncpa [#allocation4 + $0x1], 1 }

</bundles_post_ra>
